<compile_context>
chip_gen: v7x
topology: tpu7x:2x2x1
jax: 0.10.0
libtpu: 0.0.40
codegen_flags: <defaults>
</compile_context>

<pallas_src>
import functools

import jax
import jax.numpy as jnp
from jax.experimental import pallas as pl
from jax.experimental.pallas import tpu as pltpu


# ----------------------------- tiling helper -------------------------------

def _pick_block_rows(batch, feat, itemsize, target_block_bytes=2 << 20):
    """Rows per tile (~2 MiB per (rows, feat) operand block).

    Keeps (2 inputs + 1 output) x 2 pipeline buffers far below the default
    scoped-VMEM limit on all of v5e/v6e/v7x while staying >= 512 rows whenever
    the batch allows (tiled copies hit ~85% of HBM roofline at that size).
    """
    rows = target_block_bytes // max(1, feat * itemsize)
    rows = int(max(8, min(batch, rows)))
    if batch >= 8:
        rows -= rows % 8          # sublane (8) alignment for the tiled dim
    else:
        rows = batch              # block == full array dim when batch < 8
    return max(1, rows)


# ------------------ optional forward pass-through kernel -------------------
# Forward is identity, so the default hot path skips Pallas entirely; this
# kernel exists only behind a flag.  It never touches scale_weights, tiles
# over the batch axis, and aliases input->output so a donated input is free.

def _passthrough_kernel(x_ref, o_ref):
    o_ref[...] = x_ref[...]


def _pallas_passthrough(losses):
    B, D = losses.shape
    tb = _pick_block_rows(B, D, losses.dtype.itemsize)
    return pl.pallas_call(
        _passthrough_kernel,
        out_shape=jax.ShapeDtypeStruct((B, D), losses.dtype),
        grid=(pl.cdiv(B, tb),),
        in_specs=[pl.BlockSpec((tb, D), lambda i: (i, 0))],
        out_specs=pl.BlockSpec((tb, D), lambda i: (i, 0)),
        input_output_aliases={0: 0},        # in-place when input is donated
        compiler_params=pltpu.CompilerParams(
            dimension_semantics=("parallel",)),   # v7x: shard copy over 2 TCs
    )(losses)


# ----------------------- fused backward Pallas kernel ----------------------
# One memory-bound pass over (g, losses):
#   grad_input[tile]  = g[tile] * scale_weights            (written per tile)
#   grad_weights     += sum_batch(g[tile] * losses[tile])  (f32 VMEM accumulator)

def _fused_bwd_kernel(total_rows, g_ref, x_ref, s_ref, gin_ref, gw_ref, acc_ref):
    i = pl.program_id(0)
    tb = g_ref.shape[0]

    @pl.when(i == 0)
    def _init():
        acc_ref[...] = jnp.zeros_like(acc_ref)

    g = g_ref[...].astype(jnp.float32)
    s = s_ref[...].astype(jnp.float32)           # (1, D), broadcasts over rows
    gin_ref[...] = (g * s).astype(gin_ref.dtype)

    # Mask padded rows of a possibly-partial last block before reducing.
    row = i * tb + jax.lax.broadcasted_iota(jnp.int32, (tb, 1), 0)
    contrib = jnp.where(row < total_rows,
                        g * x_ref[...].astype(jnp.float32), 0.0)
    acc_ref[...] += jnp.sum(contrib, axis=0, keepdims=True)

    @pl.when(i == pl.num_programs(0) - 1)
    def _finalize():
        gw_ref[...] = acc_ref[...].astype(gw_ref.dtype)


def _pallas_fused_backward(g, losses, scale_weights):
    B, D = g.shape
    tb = _pick_block_rows(B, D, g.dtype.itemsize)
    kernel = functools.partial(_fused_bwd_kernel, B)
    grad_input, grad_weights = pl.pallas_call(
        kernel,
        out_shape=(
            jax.ShapeDtypeStruct((B, D), losses.dtype),          # grad_input
            jax.ShapeDtypeStruct((1, D), scale_weights.dtype),   # grad_weights
        ),
        grid=(pl.cdiv(B, tb),),
        in_specs=[
            pl.BlockSpec((tb, D), lambda i: (i, 0)),   # grad_output tile
            pl.BlockSpec((tb, D), lambda i: (i, 0)),   # losses tile
            pl.BlockSpec((1, D), lambda i: (0, 0)),    # scale_weights, resident
        ],
        out_specs=(
            pl.BlockSpec((tb, D), lambda i: (i, 0)),   # grad_input tile
            pl.BlockSpec((1, D), lambda i: (0, 0)),    # grad_weights accumulator
        ),
        scratch_shapes=[pltpu.VMEM((1, D), jnp.float32)],
        compiler_params=pltpu.CompilerParams(
            dimension_semantics=("arbitrary",)),       # batch axis is a reduction
    )(g, losses, scale_weights.reshape(1, D))
    return grad_input, grad_weights.reshape(D)


# ------------------- custom_vjp mirroring GradientManipulation -------------

@functools.partial(jax.custom_vjp, nondiff_argnums=(2,))
def scale_gradient(losses, scale_weights, use_pallas_forward):
    # Forward is identity -> zero bytes moved on the default hot path.
    if use_pallas_forward:
        return _pallas_passthrough(losses)
    return losses


def _scale_gradient_fwd(losses, scale_weights, use_pallas_forward):
    out = _pallas_passthrough(losses) if use_pallas_forward else losses
    # scale_weights is an nn.Parameter in the spec (trainable), so `losses`
    # must be saved as a residual for grad_weights.
    return out, (losses, scale_weights)


def _scale_gradient_bwd(use_pallas_forward, residuals, g):
    del use_pallas_forward
    losses, scale_weights = residuals
    grad_input, grad_weights = _pallas_fused_backward(g, losses, scale_weights)
    return grad_input, grad_weights


scale_gradient.defvjp(_scale_gradient_fwd, _scale_gradient_bwd)


# ------------------------------ Module wrapper -----------------------------

class ScaleGradientNet:
    """JAX/Pallas port of the PyTorch ScaleGradientNet."""

    def __init__(self, input_dim, use_pallas_forward=False):
        # torch.ones(input_dim) -> deterministic init.
        self.scale_weights = jnp.ones((input_dim,), dtype=jnp.float32)
        self.use_pallas_forward = use_pallas_forward

    def __call__(self, losses):
        if losses.ndim == 1:   # un-batched usage, as in the PyTorch spec
            return scale_gradient(losses[None, :], self.scale_weights,
                                  self.use_pallas_forward)[0]
        return scale_gradient(losses, self.scale_weights,
                              self.use_pallas_forward)


# ---------------------------------- main -----------------------------------

if __name__ == "__main__":
    B, D = 8, 128  # batch of losses, input_dim
    key = jax.random.PRNGKey(0)
    k1, k2 = jax.random.split(key)
    losses = jax.random.normal(k1, (B, D), dtype=jnp.float32)

    # (1) Default hot path: forward is a pure identity, no kernel launched.
    net = ScaleGradientNet(input_dim=D)
    out = net(losses)
    jax.block_until_ready(out)
    assert out.shape == losses.shape
    assert bool(jnp.all(out == losses))

    # (2) Flagged Pallas pass-through forward; donate at the jit boundary so
    #     input_output_aliases makes it a true in-place no-copy op.
    net_pallas = ScaleGradientNet(input_dim=D, use_pallas_forward=True)
    fwd_pallas = jax.jit(net_pallas.__call__, donate_argnums=(0,))
    losses_donatable = losses + 0.0            # fresh buffer we can give away
    out_pl = fwd_pallas(losses_donatable)
    jax.block_until_ready(out_pl)
    assert bool(jnp.all(out_pl == losses))

    # (3) Fused backward Pallas kernel vs. pure-JAX reference.
    g = jax.random.normal(k2, (B, D), dtype=jnp.float32)
    _, vjp_fn = jax.vjp(lambda x, w: scale_gradient(x, w, False),
                        losses, net.scale_weights)
    grad_in, grad_w = vjp_fn(g)
    jax.block_until_ready((grad_in, grad_w))

    grad_in_ref = g * net.scale_weights                 # broadcasts [D] over [B, D]
    grad_w_ref = (g * losses).sum(axis=0)               # reduce to param shape [D]
    assert bool(jnp.allclose(grad_in, grad_in_ref, atol=1e-5, rtol=1e-5))
    assert bool(jnp.allclose(grad_w, grad_w_ref, atol=1e-4, rtol=1e-5))

    # (4) Odd batch size exercises the partial-last-tile masking path.
    B2 = 13
    losses2 = jax.random.normal(k1, (B2, D), dtype=jnp.float32)
    g2 = jax.random.normal(k2, (B2, D), dtype=jnp.float32)
    _, vjp_fn2 = jax.vjp(lambda x, w: scale_gradient(x, w, False),
                         losses2, net.scale_weights)
    gi2, gw2 = vjp_fn2(g2)
    jax.block_until_ready((gi2, gw2))
    assert bool(jnp.allclose(gi2, g2 * net.scale_weights, atol=1e-5, rtol=1e-5))
    assert bool(jnp.allclose(gw2, (g2 * losses2).sum(axis=0), atol=1e-4, rtol=1e-5))

    print("KERNEL_OK")
</pallas_src>

<mosaic_0001>
module attributes {stable_mosaic.version = 11 : i64} {
  func.func @_passthrough_kernel(%arg0: i32, %arg1: memref<8x128xf32, #tpu.memory_space<vmem>>, %arg2: memref<8x128xf32, #tpu.memory_space<vmem>>) attributes {dimension_semantics = [#tpu.dimension_semantics<parallel>], iteration_bounds = array<i64: 1>, scalar_prefetch = 0 : i64, scratch_operands = 0 : i64, tpu.core_type = #tpu.core_type<tc>, window_params = [{transform_indices = @transform_0, window_bounds = array<i64: 8, 128>}, {transform_indices = @transform_1, window_bounds = array<i64: 8, 128>}]} {
    %c0 = arith.constant 0 : index
    %c0_0 = arith.constant 0 : index
    %0 = vector.load %arg1[%c0, %c0_0] : memref<8x128xf32, #tpu.memory_space<vmem>>, vector<8x128xf32>
    %c0_1 = arith.constant 0 : index
    %c0_2 = arith.constant 0 : index
    %1 = vector.load %arg2[%c0_1, %c0_2] : memref<8x128xf32, #tpu.memory_space<vmem>>, vector<8x128xf32>
    tpu.vector_store %arg2[%c0_1, %c0_2], %0 {strides = array<i32>} : memref<8x128xf32, #tpu.memory_space<vmem>>, vector<8x128xf32>,
    return
  }
  func.func @transform_0(%arg0: i32) -> (i32, i32) {
    %c0_i32 = arith.constant 0 : i32
    %c0_i32_0 = arith.constant 0 : i32
    return %arg0, %c0_i32 : i32, i32
  }
  func.func @transform_1(%arg0: i32) -> (i32, i32) {
    %c0_i32 = arith.constant 0 : i32
    %c0_i32_0 = arith.constant 0 : i32
    return %arg0, %c0_i32 : i32, i32
  }
}

</mosaic_0001>

<bundles_post_ra>
// kernel: a_call__.1
= control target key start
LH: loop header
LB: loop body
LE: loop exit
PB: predicated region body
PF: predicated region fallthrough
CT: control target
= control target key end

     0   :  { %6 = vsyncpa [#allocation3], 0  ;;  %s124_s0 = inlined_call_operand.hbm [shape: f32[8,128], index: 0, kind: input, shape index: {}, may-alias: {0,1}]   ;;  %s125_s1 = inlined_call_operand.hbm [shape: f32[8,128], index: 1, kind: output, shape index: {}, may-alias: {0,1}]  }
   0x1   :  { %7 = vsyncpa [#allocation4], 0  ;;  %s88_s6 = smov [#allocation2]   ;;  %s40_s10 = scalar_lea.hbm %s124_s0, 128 }
   0x2   :  { %s14_s7 = sshll.u32 %s88_s6, 4  ;;  %p41_p0 = scmp.ne.s32.totalorder %s124_s0, %s40_s10  ;;  %s15_s7 = int_to_ptr.vmem [resolvable:$true] %s14_s7 }
   0x3   :  { %p44_p1 = scmp.lt.u32.totalorder %s40_s10, %s124_s0 }
   0x5   :  { %p46_p2 = pnand %p44_p1, %p41_p0 }
   0x7   :  { %49 = shalt.err (!%p46_p2)
}
   0x8   :  { %s50_s15 = scalar_lea.vmem %s15_s7, 128  ;;  %p55_p4 = scmp.lt.s32.totalorder %s15_s7, %s15_s7 }
   0x9   :  { %p51_p3 = scmp.ne.s32.totalorder %s15_s7, %s50_s15  ;;  %p56_p5 = scmp.lt.s32.totalorder %s50_s15, %s50_s15 }
   0xb   :  { %p57_p6 = por %p56_p5, %p55_p4 }
   0xd   :  { %p58_p7 = pnand %p57_p6, %p51_p3 }
   0xf   :  { %61 = shalt.err (!%p58_p7)
}
  0x10   :  { %17 = dma.hbm_to_vmem [thread:$0]  %s124_s0, 128, %s15_s7, [#allocation3]  }
  0x11   :  { %84 = dma.done.wait [#allocation3], 128  }
  0x12   :  { %85 = vsyncadd [#allocation3], 4294967168  ;;  %s89_s18 = smov [#allocation5]   ;;  %v21_v0 = vld [vmem:[#allocation2] sm:$0xff] }
  0x13   :  { %s29_s19 = sshll.u32 %s89_s18, 4  ;;  %22 = vst [vmem:[#allocation5] sm:$0xff] %v21_v0  ;;  %s30_s19 = int_to_ptr.vmem [resolvable:$true] %s29_s19 }
  0x14   :  { %s62_s20 = scalar_lea.vmem %s30_s19, 128  ;;  %p67_p9 = scmp.lt.s32.totalorder %s30_s19, %s30_s19 }
  0x15   :  { %p63_p8 = scmp.ne.s32.totalorder %s30_s19, %s62_s20  ;;  %p68_p10 = scmp.lt.s32.totalorder %s62_s20, %s62_s20 }
  0x17   :  { %p69_p11 = por %p68_p10, %p67_p9 }
  0x19   :  { %p70_p12 = pnand %p69_p11, %p63_p8 }
  0x1b   :  { %73 = shalt.err (!%p70_p12)
}
  0x1c   :  { %s74_s23 = scalar_lea.hbm %s125_s1, 128 }
  0x1d   :  { %p75_p13 = scmp.ne.s32.totalorder %s125_s1, %s74_s23  ;;  %p78_p0 = scmp.lt.u32.totalorder %s74_s23, %s125_s1 }
  0x1f   :  { %p80_p1 = pnand %p78_p0, %p75_p13 }
  0x21   :  { %83 = shalt.err (!%p80_p1)
}
  0x22   :  { %32 = dma.vmem_to_hbm [thread:$0]  %s30_s19, 128, %s125_s1, [#allocation4]  }
  0x23   :  { %86 = dma.done.wait [#allocation4], 128  }
  0x24   :  { %87 = vsyncadd [#allocation4], 4294967168 }
  0x25   :  { %36 = vsyncpa [#allocation3], 1 }
  0x26   :  { %37 = vsyncpa [#allocation4], 1 }

</bundles_post_ra>
